<compile_context>
chip_gen: v5e
topology: v5e:2x2
jax: 0.10.0
libtpu: 0.0.40
codegen_flags: <defaults>
</compile_context>

<pallas_src>
import functools

import jax
import jax.numpy as jnp
from jax import lax
from jax.experimental import pallas as pl
from jax.experimental.pallas import tpu as pltpu


_MASK_VALUE = -1e30          # finite large-negative fill for padded KV slots
_DEFAULT_TQ = 256            # query-tile upper bound
_DEFAULT_TK = 512            # kv-tile upper bound


def _round_up(x, m):
    return (x + m - 1) // m * m


# ----------------------------------------------------------------------------
# Fused flash-attention kernel
# ----------------------------------------------------------------------------
def _flash_attention_kernel(x_ref, ctx_ref, wq_ref, wk_ref, wv_ref, wo_ref,
                            bo_ref, o_ref, q_sc, acc_sc, m_sc, l_sc,
                            *, heads, dim_head, kv_len, kv_tile):
    """One grid step = (batch b, query tile qi, kv tile ki).

    Blocks:
      x_ref  (1, tq, Dq) bf16          ctx_ref (1, tk, Dc) bf16
      wq_ref (Dq, H*d)   bf16 (scale pre-folded)
      wk_ref / wv_ref (Dc, H*d) bf16   wo_ref (H*d, Dq) bf16   bo_ref (1, Dq) f32
      o_ref  (1, tq, Dq)
    Scratch (persists across the kv grid axis):
      q_sc (tq, H*d) bf16, acc_sc (tq, H*d) f32, m_sc/l_sc (H, tq, 1) f32.
    """
    ki = pl.program_id(2)
    nk = pl.num_programs(2)
    f32 = jnp.float32

    @pl.when(ki == 0)
    def _init():
        # Q projection once per (b, q-tile): a single full-width matmul
        # (contraction Dq, output width H*d) keeps the MXU columns filled.
        q = jnp.dot(x_ref[0], wq_ref[...], preferred_element_type=f32)
        q_sc[...] = q.astype(q_sc.dtype)
        acc_sc[...] = jnp.zeros_like(acc_sc)
        m_sc[...] = jnp.full_like(m_sc, -jnp.inf)
        l_sc[...] = jnp.zeros_like(l_sc)

    # K / V projections for this kv tile: full-width (Dc x H*d) matmuls,
    # bf16 operands, f32 accumulation.
    # TODO(synk): when n/tq is large, K/V projections are recomputed per query
    # tile; a separate projection pass (or caching in HBM) would avoid that.
    ctx = ctx_ref[0]
    k_full = jnp.dot(ctx, wk_ref[...],
                     preferred_element_type=f32).astype(jnp.bfloat16)
    v_full = jnp.dot(ctx, wv_ref[...],
                     preferred_element_type=f32).astype(jnp.bfloat16)

    # Trace-time decision: only the last kv tile can contain sequence padding.
    need_mask = (kv_len % kv_tile) != 0
    if need_mask:
        kv_pos = ki * kv_tile + lax.broadcasted_iota(jnp.int32, (1, kv_tile), 1)
        kv_valid = kv_pos < kv_len                       # (1, tk)

    # Per-head online softmax.  Heads are d-wide lane slices of the combined
    # (., H*d) layout so projections and the output projection stay full-width.
    for h in range(heads):                               # static unroll
        sl = slice(h * dim_head, (h + 1) * dim_head)
        q_h = q_sc[:, sl]                                # (tq, d) bf16
        k_h = k_full[:, sl]                              # (tk, d) bf16
        v_h = v_full[:, sl]                              # (tk, d) bf16

        # scores: contract over d (no explicit transpose of k)
        s = lax.dot_general(q_h, k_h, (((1,), (1,)), ((), ())),
                            preferred_element_type=f32)  # (tq, tk)
        if need_mask:
            s = jnp.where(kv_valid, s, _MASK_VALUE)

        m_prev = m_sc[h]                                 # (tq, 1)
        m_new = jnp.maximum(m_prev, jnp.max(s, axis=-1, keepdims=True))
        alpha = jnp.exp(m_prev - m_new)                  # (tq, 1)
        # TODO(synk): a bf16 exp path would roughly double EUP throughput on
        # v6e/v7x; kept in f32 so the same kernel is also valid on v5e.
        p = jnp.exp(s - m_new)                           # (tq, tk) f32

        l_sc[h] = alpha * l_sc[h] + jnp.sum(p, axis=-1, keepdims=True)
        m_sc[h] = m_new
        pv = jnp.dot(p.astype(jnp.bfloat16), v_h,
                     preferred_element_type=f32)         # (tq, d)
        acc_sc[:, sl] = alpha * acc_sc[:, sl] + pv

    @pl.when(ki == nk - 1)
    def _finalize():
        # Deferred softmax normalization per head (EUP reciprocal).
        for h in range(heads):
            sl = slice(h * dim_head, (h + 1) * dim_head)
            acc_sc[:, sl] = acc_sc[:, sl] * pl.reciprocal(l_sc[h], approx=True)
        # Output projection: ONE matmul contracting the full H*d inner dim
        # (no per-head matmul / head-sum), then bias, lane-dense (tq, Dq) store.
        y = jnp.dot(acc_sc[...].astype(jnp.bfloat16), wo_ref[...],
                    preferred_element_type=f32)
        y = y + bo_ref[...].astype(f32)
        o_ref[0] = y.astype(o_ref.dtype)


# ----------------------------------------------------------------------------
# Wrapper
# ----------------------------------------------------------------------------
def attention_forward(x, params, *, heads, dim_head, context=None):
    """Pallas equivalent of Attention.forward (mask=None path)."""
    wq, wkv, wo, bo = params        # pre-transposed torch weights: y = x @ W
    b, n, dq = x.shape
    ctx = x if context is None else context
    m, dc = ctx.shape[1], ctx.shape[2]
    inner = heads * dim_head
    assert wq.shape == (dq, inner) and wkv.shape == (dc, 2 * inner)
    assert wo.shape == (inner, dq) and bo.shape == (dq,)
    out_dtype = x.dtype

    # ---- weight packing (hoist to parameter-load time in a real model) ----
    scale = dim_head ** (-0.5)
    wq_p = (wq * scale).astype(jnp.bfloat16)             # scale folded into Wq
    wk_p, wv_p = jnp.split(wkv, 2, axis=-1)              # torch chunk(2): [K|V]
    wk_p = wk_p.astype(jnp.bfloat16)
    wv_p = wv_p.astype(jnp.bfloat16)
    wo_p = wo.astype(jnp.bfloat16)
    bo_p = bo.reshape(1, dq).astype(jnp.float32)

    # ---- tile selection under a per-generation VMEM budget ----
    try:
        cap = int(pltpu.get_tpu_info().vmem_capacity_bytes)
    except Exception:
        cap = 64 << 20                                   # conservative fallback
    budget = int(cap * 0.85)       # ~110 MiB on v5e/v6e, ~54 MiB on v7x

    out_bytes = jnp.dtype(out_dtype).itemsize

    def vmem_estimate(tq_, tk_):
        bf, f4 = 2, 4
        io = 2 * (tq_ * dq + tk_ * dc) * bf + 2 * tq_ * dq * out_bytes
        wt = 2 * (dq * inner + 2 * dc * inner + inner * dq) * bf + 2 * dq * f4
        sc = tq_ * inner * (bf + f4) + 2 * heads * tq_ * 128 * f4
        tmp = (tk_ * inner * (bf + f4)
               + min(heads, 4) * tq_ * tk_ * f4
               + 2 * tq_ * max(inner, dq) * f4)
        return io + wt + sc + tmp

    tq = _round_up(n, 8) if n <= _DEFAULT_TQ else _DEFAULT_TQ
    tk = _round_up(m, 8) if m <= _DEFAULT_TK else _DEFAULT_TK
    while vmem_estimate(tq, tk) > budget and tk > 128:
        tk //= 2
    while vmem_estimate(tq, tk) > budget and tq > 64:
        tq //= 2

    n_pad = _round_up(n, tq)
    m_pad = _round_up(m, tk)

    x_b = x.astype(jnp.bfloat16)                         # half the DMA bytes
    ctx_b = ctx.astype(jnp.bfloat16)
    if n_pad != n:
        x_b = jnp.pad(x_b, ((0, 0), (0, n_pad - n), (0, 0)))
    if m_pad != m:
        ctx_b = jnp.pad(ctx_b, ((0, 0), (0, m_pad - m), (0, 0)))

    grid = (b, n_pad // tq, m_pad // tk)
    kernel = functools.partial(_flash_attention_kernel, heads=heads,
                               dim_head=dim_head, kv_len=m, kv_tile=tk)

    # TODO(synk): the constant-index weight blocks are still double-buffered by
    # the default pipeline; pl.Buffered(1) via BlockSpec(pipeline_mode=...)
    # would halve their VMEM footprint once single-buffering is confirmed
    # supported by the installed Pallas version.
    out = pl.pallas_call(
        kernel,
        out_shape=jax.ShapeDtypeStruct((b, n_pad, dq), out_dtype),
        grid=grid,
        in_specs=[
            pl.BlockSpec((1, tq, dq), lambda bi, qi, ki: (bi, qi, 0)),   # x
            pl.BlockSpec((1, tk, dc), lambda bi, qi, ki: (bi, ki, 0)),   # ctx
            pl.BlockSpec((dq, inner), lambda bi, qi, ki: (0, 0)),        # Wq*s
            pl.BlockSpec((dc, inner), lambda bi, qi, ki: (0, 0)),        # Wk
            pl.BlockSpec((dc, inner), lambda bi, qi, ki: (0, 0)),        # Wv
            pl.BlockSpec((inner, dq), lambda bi, qi, ki: (0, 0)),        # Wo
            pl.BlockSpec((1, dq), lambda bi, qi, ki: (0, 0)),            # bo
        ],
        out_specs=pl.BlockSpec((1, tq, dq), lambda bi, qi, ki: (bi, qi, 0)),
        scratch_shapes=[
            pltpu.VMEM((tq, inner), jnp.bfloat16),     # q tile
            pltpu.VMEM((tq, inner), jnp.float32),      # output accumulator
            pltpu.VMEM((heads, tq, 1), jnp.float32),   # running max
            pltpu.VMEM((heads, tq, 1), jnp.float32),   # running denominator
        ],
        compiler_params=pltpu.CompilerParams(
            dimension_semantics=("parallel", "parallel", "arbitrary"),
            vmem_limit_bytes=budget,
        ),
    )(x_b, ctx_b, wq_p, wk_p, wv_p, wo_p, bo_p)

    return out[:, :n, :] if n_pad != n else out


# ----------------------------------------------------------------------------
# Pure-JAX reference (mirrors the torch module) and param init
# ----------------------------------------------------------------------------
def attention_reference(x, params, *, heads, dim_head, context=None):
    wq, wkv, wo, bo = params
    ctx = x if context is None else context
    b, n, _ = x.shape
    m = ctx.shape[1]
    q = x @ wq
    k, v = jnp.split(ctx @ wkv, 2, axis=-1)
    q = q.reshape(b, n, heads, dim_head).transpose(0, 2, 1, 3)
    k = k.reshape(b, m, heads, dim_head).transpose(0, 2, 1, 3)
    v = v.reshape(b, m, heads, dim_head).transpose(0, 2, 1, 3)
    sim = jnp.einsum('bhnd,bhmd->bhnm', q, k) * dim_head ** (-0.5)
    attn = jax.nn.softmax(sim, axis=-1)
    out = jnp.einsum('bhnm,bhmd->bhnd', attn, v)
    out = out.transpose(0, 2, 1, 3).reshape(b, n, heads * dim_head)
    return out @ wo + bo


def init_attention_params(key, query_dim, context_dim, heads, dim_head):
    inner = heads * dim_head
    k1, k2, k3, k4 = jax.random.split(key, 4)
    wq = jax.random.normal(k1, (query_dim, inner), jnp.float32) * 0.05
    wkv = jax.random.normal(k2, (context_dim, 2 * inner), jnp.float32) * 0.05
    wo = jax.random.normal(k3, (inner, query_dim), jnp.float32) * 0.05
    bo = jax.random.normal(k4, (query_dim,), jnp.float32) * 0.05
    return wq, wkv, wo, bo


if __name__ == "__main__":
    # small shapes consistent with the module
    B, N, QUERY_DIM = 2, 8, 32
    HEADS, DIM_HEAD = 2, 16
    CONTEXT_DIM = QUERY_DIM          # context defaults to x

    key = jax.random.PRNGKey(0)
    kx, kp = jax.random.split(key)
    x = jax.random.normal(kx, (B, N, QUERY_DIM), jnp.float32)
    params = init_attention_params(kp, QUERY_DIM, CONTEXT_DIM, HEADS, DIM_HEAD)

    fwd = jax.jit(functools.partial(attention_forward,
                                    heads=HEADS, dim_head=DIM_HEAD))
    y = fwd(x, params)
    jax.block_until_ready(y)
    assert y.shape == (B, N, QUERY_DIM)

    y_ref = attention_reference(x, params, heads=HEADS, dim_head=DIM_HEAD)
    err = float(jnp.max(jnp.abs(y - y_ref)))
    ref_scale = float(jnp.max(jnp.abs(y_ref))) + 1e-6
    assert err / ref_scale < 2e-2, f"mismatch: abs {err}, rel {err / ref_scale}"

    print("KERNEL_OK")
</pallas_src>

<mosaic_0001>
module attributes {stable_mosaic.version = 11 : i64} {
  func.func @_flash_attention_kernel(%arg0: i32, %arg1: i32, %arg2: i32, %arg3: memref<1x8x32xbf16, #tpu.memory_space<vmem>>, %arg4: memref<1x8x32xbf16, #tpu.memory_space<vmem>>, %arg5: memref<32x32xbf16, #tpu.memory_space<vmem>>, %arg6: memref<32x32xbf16, #tpu.memory_space<vmem>>, %arg7: memref<32x32xbf16, #tpu.memory_space<vmem>>, %arg8: memref<32x32xbf16, #tpu.memory_space<vmem>>, %arg9: memref<1x32xf32, #tpu.memory_space<vmem>>, %arg10: memref<1x8x32xf32, #tpu.memory_space<vmem>>, %arg11: memref<8x32xbf16, #tpu.memory_space<vmem>>, %arg12: memref<8x32xf32, #tpu.memory_space<vmem>>, %arg13: memref<2x8x1xf32, #tpu.memory_space<vmem>>, %arg14: memref<2x8x1xf32, #tpu.memory_space<vmem>>) attributes {dimension_semantics = [#tpu.dimension_semantics<parallel>, #tpu.dimension_semantics<parallel>, #tpu.dimension_semantics<arbitrary>], iteration_bounds = array<i64: 2, 1, 1>, scalar_prefetch = 0 : i64, scratch_operands = 4 : i64, tpu.core_type = #tpu.core_type<tc>, window_params = [{transform_indices = @transform_0, window_bounds = array<i64: 1, 8, 32>}, {transform_indices = @transform_1, window_bounds = array<i64: 1, 8, 32>}, {pipeline_mode = #tpu.pipeline_mode<synchronous>, transform_indices = @transform_2, window_bounds = array<i64: 32, 32>}, {pipeline_mode = #tpu.pipeline_mode<synchronous>, transform_indices = @transform_3, window_bounds = array<i64: 32, 32>}, {pipeline_mode = #tpu.pipeline_mode<synchronous>, transform_indices = @transform_4, window_bounds = array<i64: 32, 32>}, {pipeline_mode = #tpu.pipeline_mode<synchronous>, transform_indices = @transform_5, window_bounds = array<i64: 32, 32>}, {pipeline_mode = #tpu.pipeline_mode<synchronous>, transform_indices = @transform_6, window_bounds = array<i64: 1, 32>}, {transform_indices = @transform_7, window_bounds = array<i64: 1, 8, 32>}]} {
    %c0_i32 = arith.constant 0 : i32
    %0 = arith.cmpi eq, %arg2, %c0_i32 : i32
    %1 = arith.extui %0 : i1 to i32
    %c0_i32_0 = arith.constant 0 : i32
    %2 = arith.cmpi ne, %1, %c0_i32_0 : i32
    scf.if %2 {
      %c0_52 = arith.constant 0 : index
      %c0_53 = arith.constant 0 : index
      %c0_54 = arith.constant 0 : index
      %80 = vector.load %arg3[%c0_52, %c0_53, %c0_54] : memref<1x8x32xbf16, #tpu.memory_space<vmem>>, vector<1x8x32xbf16>
      %81 = vector.shape_cast %80 : vector<1x8x32xbf16> to vector<8x32xbf16>
      %c0_55 = arith.constant 0 : index
      %c0_56 = arith.constant 0 : index
      %82 = vector.load %arg5[%c0_55, %c0_56] : memref<32x32xbf16, #tpu.memory_space<vmem>>, vector<32x32xbf16>
      %cst_57 = arith.constant dense<0.000000e+00> : vector<8x32xf32>
      %83 = tpu.matmul %81, %82, %cst_57 {dimension_numbers = #tpu.dot_dimension_numbers<[1], [0], [0], [1], [0, 0, 1, 1], [], []>} : vector<8x32xbf16>, vector<32x32xbf16>, vector<8x32xf32> -> vector<8x32xf32>
      %84 = arith.truncf %83 : vector<8x32xf32> to vector<8x32xbf16>
      %c0_58 = arith.constant 0 : index
      %c0_59 = arith.constant 0 : index
      %85 = vector.load %arg11[%c0_58, %c0_59] : memref<8x32xbf16, #tpu.memory_space<vmem>>, vector<8x32xbf16>
      tpu.vector_store %arg11[%c0_58, %c0_59], %84 {strides = array<i32>} : memref<8x32xbf16, #tpu.memory_space<vmem>>, vector<8x32xbf16>,
      %cst_60 = arith.constant 0.000000e+00 : f32
      %86 = vector.broadcast %cst_60 : f32 to vector<8x32xf32>
      %c0_61 = arith.constant 0 : index
      %c0_62 = arith.constant 0 : index
      %87 = vector.load %arg12[%c0_61, %c0_62] : memref<8x32xf32, #tpu.memory_space<vmem>>, vector<8x32xf32>
      tpu.vector_store %arg12[%c0_61, %c0_62], %86 {strides = array<i32>} : memref<8x32xf32, #tpu.memory_space<vmem>>, vector<8x32xf32>,
      %cst_63 = arith.constant 0xFF800000 : f32
      %88 = vector.broadcast %cst_63 : f32 to vector<2x8x1xf32>
      %c0_64 = arith.constant 0 : index
      %c0_65 = arith.constant 0 : index
      %c0_66 = arith.constant 0 : index
      %89 = vector.load %arg13[%c0_64, %c0_65, %c0_66] : memref<2x8x1xf32, #tpu.memory_space<vmem>>, vector<2x8x1xf32>
      tpu.vector_store %arg13[%c0_64, %c0_65, %c0_66], %88 {strides = array<i32>} : memref<2x8x1xf32, #tpu.memory_space<vmem>>, vector<2x8x1xf32>,
      %cst_67 = arith.constant 0.000000e+00 : f32
      %90 = vector.broadcast %cst_67 : f32 to vector<2x8x1xf32>
      %c0_68 = arith.constant 0 : index
      %c0_69 = arith.constant 0 : index
      %c0_70 = arith.constant 0 : index
      %91 = vector.load %arg14[%c0_68, %c0_69, %c0_70] : memref<2x8x1xf32, #tpu.memory_space<vmem>>, vector<2x8x1xf32>
      tpu.vector_store %arg14[%c0_68, %c0_69, %c0_70], %90 {strides = array<i32>} : memref<2x8x1xf32, #tpu.memory_space<vmem>>, vector<2x8x1xf32>,
    } else {
    }
    %c0 = arith.constant 0 : index
    %c0_1 = arith.constant 0 : index
    %c0_2 = arith.constant 0 : index
    %3 = vector.load %arg4[%c0, %c0_1, %c0_2] : memref<1x8x32xbf16, #tpu.memory_space<vmem>>, vector<1x8x32xbf16>
    %4 = vector.shape_cast %3 : vector<1x8x32xbf16> to vector<8x32xbf16>
    %c0_3 = arith.constant 0 : index
    %c0_4 = arith.constant 0 : index
    %5 = vector.load %arg6[%c0_3, %c0_4] : memref<32x32xbf16, #tpu.memory_space<vmem>>, vector<32x32xbf16>
    %cst = arith.constant dense<0.000000e+00> : vector<8x32xf32>
    %6 = tpu.matmul %4, %5, %cst {dimension_numbers = #tpu.dot_dimension_numbers<[1], [0], [0], [1], [0, 0, 1, 1], [], []>} : vector<8x32xbf16>, vector<32x32xbf16>, vector<8x32xf32> -> vector<8x32xf32>
    %7 = arith.truncf %6 : vector<8x32xf32> to vector<8x32xbf16>
    %c0_5 = arith.constant 0 : index
    %c0_6 = arith.constant 0 : index
    %8 = vector.load %arg7[%c0_5, %c0_6] : memref<32x32xbf16, #tpu.memory_space<vmem>>, vector<32x32xbf16>
    %cst_7 = arith.constant dense<0.000000e+00> : vector<8x32xf32>
    %9 = tpu.matmul %4, %8, %cst_7 {dimension_numbers = #tpu.dot_dimension_numbers<[1], [0], [0], [1], [0, 0, 1, 1], [], []>} : vector<8x32xbf16>, vector<32x32xbf16>, vector<8x32xf32> -> vector<8x32xf32>
    %10 = arith.truncf %9 : vector<8x32xf32> to vector<8x32xbf16>
    %c0_8 = arith.constant 0 : index
    %c0_9 = arith.constant 0 : index
    %11 = vector.load %arg11[%c0_8, %c0_9] : memref<8x32xbf16, #tpu.memory_space<vmem>>, vector<8x16xbf16>
    %12 = vector.extract_strided_slice %7 {offsets = [0, 0], sizes = [8, 16], strides = [1, 1]} : vector<8x32xbf16> to vector<8x16xbf16>
    %13 = vector.extract_strided_slice %10 {offsets = [0, 0], sizes = [8, 16], strides = [1, 1]} : vector<8x32xbf16> to vector<8x16xbf16>
    %cst_10 = arith.constant dense<0.000000e+00> : vector<8x8xf32>
    %14 = tpu.matmul %11, %12, %cst_10 {dimension_numbers = #tpu.dot_dimension_numbers<[1], [1], [0], [0], [0, 0, 1, 0], [], []>} : vector<8x16xbf16>, vector<8x16xbf16>, vector<8x8xf32> -> vector<8x8xf32>
    %c0_11 = arith.constant 0 : index
    %c0_12 = arith.constant 0 : index
    %c0_13 = arith.constant 0 : index
    %15 = vector.load %arg13[%c0_11, %c0_12, %c0_13] : memref<2x8x1xf32, #tpu.memory_space<vmem>>, vector<1x8x1xf32>
    %16 = vector.shape_cast %15 : vector<1x8x1xf32> to vector<8x1xf32>
    %cst_14 = arith.constant dense<0xFF800000> : vector<8xf32>
    %17 = vector.multi_reduction <maximumf>, %14, %cst_14 [1] : vector<8x8xf32> to vector<8xf32>
    %18 = vector.shape_cast %17 : vector<8xf32> to vector<8x1xf32>
    %19 = arith.maximumf %16, %18 : vector<8x1xf32>
    %20 = arith.subf %16, %19 : vector<8x1xf32>
    %21 = math.exp %20 : vector<8x1xf32>
    %22 = vector.broadcast %19 : vector<8x1xf32> to vector<8x8xf32>
    %23 = arith.subf %14, %22 : vector<8x8xf32>
    %24 = math.exp %23 : vector<8x8xf32>
    %c0_15 = arith.constant 0 : index
    %c0_16 = arith.constant 0 : index
    %c0_17 = arith.constant 0 : index
    %25 = vector.load %arg14[%c0_15, %c0_16, %c0_17] : memref<2x8x1xf32, #tpu.memory_space<vmem>>, vector<1x8x1xf32>
    %26 = vector.shape_cast %25 : vector<1x8x1xf32> to vector<8x1xf32>
    %27 = arith.mulf %21, %26 : vector<8x1xf32>
    %cst_18 = arith.constant dense<0.000000e+00> : vector<8xf32>
    %28 = vector.multi_reduction <add>, %24, %cst_18 [1] : vector<8x8xf32> to vector<8xf32>
    %29 = vector.shape_cast %28 : vector<8xf32> to vector<8x1xf32>
    %30 = arith.addf %27, %29 : vector<8x1xf32>
    %c0_19 = arith.constant 0 : index
    %c0_20 = arith.constant 0 : index
    %c0_21 = arith.constant 0 : index
    %31 = vector.load %arg14[%c0_19, %c0_20, %c0_21] : memref<2x8x1xf32, #tpu.memory_space<vmem>>, vector<1x8x1xf32>
    %32 = vector.shape_cast %31 : vector<1x8x1xf32> to vector<8x1xf32>
    %33 = vector.shape_cast %30 : vector<8x1xf32> to vector<1x8x1xf32>
    tpu.vector_store %arg14[%c0_19, %c0_20, %c0_21], %33 {strides = array<i32>} : memref<2x8x1xf32, #tpu.memory_space<vmem>>, vector<1x8x1xf32>,
    %c0_22 = arith.constant 0 : index
    %c0_23 = arith.constant 0 : index
    %c0_24 = arith.constant 0 : index
    %34 = vector.load %arg13[%c0_22, %c0_23, %c0_24] : memref<2x8x1xf32, #tpu.memory_space<vmem>>, vector<1x8x1xf32>
    %35 = vector.shape_cast %34 : vector<1x8x1xf32> to vector<8x1xf32>
    %36 = vector.shape_cast %19 : vector<8x1xf32> to vector<1x8x1xf32>
    tpu.vector_store %arg13[%c0_22, %c0_23, %c0_24], %36 {strides = array<i32>} : memref<2x8x1xf32, #tpu.memory_space<vmem>>, vector<1x8x1xf32>,
    %37 = arith.truncf %24 : vector<8x8xf32> to vector<8x8xbf16>
    %cst_25 = arith.constant dense<0.000000e+00> : vector<8x16xf32>
    %38 = tpu.matmul %37, %13, %cst_25 {dimension_numbers = #tpu.dot_dimension_numbers<[1], [0], [0], [1], [0, 0, 1, 1], [], []>} : vector<8x8xbf16>, vector<8x16xbf16>, vector<8x16xf32> -> vector<8x16xf32>
    %c0_26 = arith.constant 0 : index
    %c0_27 = arith.constant 0 : index
    %39 = vector.load %arg12[%c0_26, %c0_27] : memref<8x32xf32, #tpu.memory_space<vmem>>, vector<8x16xf32>
    %40 = vector.broadcast %21 : vector<8x1xf32> to vector<8x16xf32>
    %41 = arith.mulf %40, %39 : vector<8x16xf32>
    %42 = arith.addf %41, %38 : vector<8x16xf32>
    %c0_28 = arith.constant 0 : index
    %c0_29 = arith.constant 0 : index
    %43 = vector.load %arg12[%c0_28, %c0_29] : memref<8x32xf32, #tpu.memory_space<vmem>>, vector<8x16xf32>
    tpu.vector_store %arg12[%c0_28, %c0_29], %42 {strides = array<i32>} : memref<8x32xf32, #tpu.memory_space<vmem>>, vector<8x16xf32>,
    %c0_30 = arith.constant 0 : index
    %c16 = arith.constant 16 : index
    %44 = vector.load %arg11[%c0_30, %c16] : memref<8x32xbf16, #tpu.memory_space<vmem>>, vector<8x16xbf16>
    %45 = vector.extract_strided_slice %7 {offsets = [0, 16], sizes = [8, 16], strides = [1, 1]} : vector<8x32xbf16> to vector<8x16xbf16>
    %46 = vector.extract_strided_slice %10 {offsets = [0, 16], sizes = [8, 16], strides = [1, 1]} : vector<8x32xbf16> to vector<8x16xbf16>
    %cst_31 = arith.constant dense<0.000000e+00> : vector<8x8xf32>
    %47 = tpu.matmul %44, %45, %cst_31 {dimension_numbers = #tpu.dot_dimension_numbers<[1], [1], [0], [0], [0, 0, 1, 0], [], []>} : vector<8x16xbf16>, vector<8x16xbf16>, vector<8x8xf32> -> vector<8x8xf32>
    %c1 = arith.constant 1 : index
    %c0_32 = arith.constant 0 : index
    %c0_33 = arith.constant 0 : index
    %48 = vector.load %arg13[%c1, %c0_32, %c0_33] : memref<2x8x1xf32, #tpu.memory_space<vmem>>, vector<1x8x1xf32>
    %49 = vector.shape_cast %48 : vector<1x8x1xf32> to vector<8x1xf32>
    %cst_34 = arith.constant dense<0xFF800000> : vector<8xf32>
    %50 = vector.multi_reduction <maximumf>, %47, %cst_34 [1] : vector<8x8xf32> to vector<8xf32>
    %51 = vector.shape_cast %50 : vector<8xf32> to vector<8x1xf32>
    %52 = arith.maximumf %49, %51 : vector<8x1xf32>
    %53 = arith.subf %49, %52 : vector<8x1xf32>
    %54 = math.exp %53 : vector<8x1xf32>
    %55 = vector.broadcast %52 : vector<8x1xf32> to vector<8x8xf32>
    %56 = arith.subf %47, %55 : vector<8x8xf32>
    %57 = math.exp %56 : vector<8x8xf32>
    %c1_35 = arith.constant 1 : index
    %c0_36 = arith.constant 0 : index
    %c0_37 = arith.constant 0 : index
    %58 = vector.load %arg14[%c1_35, %c0_36, %c0_37] : memref<2x8x1xf32, #tpu.memory_space<vmem>>, vector<1x8x1xf32>
    %59 = vector.shape_cast %58 : vector<1x8x1xf32> to vector<8x1xf32>
    %60 = arith.mulf %54, %59 : vector<8x1xf32>
    %cst_38 = arith.constant dense<0.000000e+00> : vector<8xf32>
    %61 = vector.multi_reduction <add>, %57, %cst_38 [1] : vector<8x8xf32> to vector<8xf32>
    %62 = vector.shape_cast %61 : vector<8xf32> to vector<8x1xf32>
    %63 = arith.addf %60, %62 : vector<8x1xf32>
    %c1_39 = arith.constant 1 : index
    %c0_40 = arith.constant 0 : index
    %c0_41 = arith.constant 0 : index
    %64 = vector.load %arg14[%c1_39, %c0_40, %c0_41] : memref<2x8x1xf32, #tpu.memory_space<vmem>>, vector<1x8x1xf32>
    %65 = vector.shape_cast %64 : vector<1x8x1xf32> to vector<8x1xf32>
    %66 = vector.shape_cast %63 : vector<8x1xf32> to vector<1x8x1xf32>
    tpu.vector_store %arg14[%c1_39, %c0_40, %c0_41], %66 {strides = array<i32>} : memref<2x8x1xf32, #tpu.memory_space<vmem>>, vector<1x8x1xf32>,
    %c1_42 = arith.constant 1 : index
    %c0_43 = arith.constant 0 : index
    %c0_44 = arith.constant 0 : index
    %67 = vector.load %arg13[%c1_42, %c0_43, %c0_44] : memref<2x8x1xf32, #tpu.memory_space<vmem>>, vector<1x8x1xf32>
    %68 = vector.shape_cast %67 : vector<1x8x1xf32> to vector<8x1xf32>
    %69 = vector.shape_cast %52 : vector<8x1xf32> to vector<1x8x1xf32>
    tpu.vector_store %arg13[%c1_42, %c0_43, %c0_44], %69 {strides = array<i32>} : memref<2x8x1xf32, #tpu.memory_space<vmem>>, vector<1x8x1xf32>,
    %70 = arith.truncf %57 : vector<8x8xf32> to vector<8x8xbf16>
    %cst_45 = arith.constant dense<0.000000e+00> : vector<8x16xf32>
    %71 = tpu.matmul %70, %46, %cst_45 {dimension_numbers = #tpu.dot_dimension_numbers<[1], [0], [0], [1], [0, 0, 1, 1], [], []>} : vector<8x8xbf16>, vector<8x16xbf16>, vector<8x16xf32> -> vector<8x16xf32>
    %c0_46 = arith.constant 0 : index
    %c16_47 = arith.constant 16 : index
    %72 = vector.load %arg12[%c0_46, %c16_47] : memref<8x32xf32, #tpu.memory_space<vmem>>, vector<8x16xf32>
    %73 = vector.broadcast %54 : vector<8x1xf32> to vector<8x16xf32>
    %74 = arith.mulf %73, %72 : vector<8x16xf32>
    %75 = arith.addf %74, %71 : vector<8x16xf32>
    %c0_48 = arith.constant 0 : index
    %c16_49 = arith.constant 16 : index
    %76 = vector.load %arg12[%c0_48, %c16_49] : memref<8x32xf32, #tpu.memory_space<vmem>>, vector<8x16xf32>
    tpu.vector_store %arg12[%c0_48, %c16_49], %75 {strides = array<i32>} : memref<8x32xf32, #tpu.memory_space<vmem>>, vector<8x16xf32>,
    %c0_i32_50 = arith.constant 0 : i32
    %77 = arith.cmpi eq, %arg2, %c0_i32_50 : i32
    %78 = arith.extui %77 : i1 to i32
    %c0_i32_51 = arith.constant 0 : i32
    %79 = arith.cmpi ne, %78, %c0_i32_51 : i32
    scf.if %79 {
      %c0_52 = arith.constant 0 : index
      %c0_53 = arith.constant 0 : index
      %80 = vector.load %arg12[%c0_52, %c0_53] : memref<8x32xf32, #tpu.memory_space<vmem>>, vector<8x16xf32>
      %c0_54 = arith.constant 0 : index
      %c0_55 = arith.constant 0 : index
      %c0_56 = arith.constant 0 : index
      %81 = vector.load %arg14[%c0_54, %c0_55, %c0_56] : memref<2x8x1xf32, #tpu.memory_space<vmem>>, vector<1x8x1xf32>
      %82 = vector.shape_cast %81 : vector<1x8x1xf32> to vector<8x1xf32>
      %83 = tpu.reciprocal %82 {approx = true} : vector<8x1xf32> -> vector<8x1xf32>
      %84 = vector.broadcast %83 : vector<8x1xf32> to vector<8x16xf32>
      %85 = arith.mulf %80, %84 : vector<8x16xf32>
      %c0_57 = arith.constant 0 : index
      %c0_58 = arith.constant 0 : index
      %86 = vector.load %arg12[%c0_57, %c0_58] : memref<8x32xf32, #tpu.memory_space<vmem>>, vector<8x16xf32>
      tpu.vector_store %arg12[%c0_57, %c0_58], %85 {strides = array<i32>} : memref<8x32xf32, #tpu.memory_space<vmem>>, vector<8x16xf32>,
      %c0_59 = arith.constant 0 : index
      %c16_60 = arith.constant 16 : index
      %87 = vector.load %arg12[%c0_59, %c16_60] : memref<8x32xf32, #tpu.memory_space<vmem>>, vector<8x16xf32>
      %c1_61 = arith.constant 1 : index
      %c0_62 = arith.constant 0 : index
      %c0_63 = arith.constant 0 : index
      %88 = vector.load %arg14[%c1_61, %c0_62, %c0_63] : memref<2x8x1xf32, #tpu.memory_space<vmem>>, vector<1x8x1xf32>
      %89 = vector.shape_cast %88 : vector<1x8x1xf32> to vector<8x1xf32>
      %90 = tpu.reciprocal %89 {approx = true} : vector<8x1xf32> -> vector<8x1xf32>
      %91 = vector.broadcast %90 : vector<8x1xf32> to vector<8x16xf32>
      %92 = arith.mulf %87, %91 : vector<8x16xf32>
      %c0_64 = arith.constant 0 : index
      %c16_65 = arith.constant 16 : index
      %93 = vector.load %arg12[%c0_64, %c16_65] : memref<8x32xf32, #tpu.memory_space<vmem>>, vector<8x16xf32>
      tpu.vector_store %arg12[%c0_64, %c16_65], %92 {strides = array<i32>} : memref<8x32xf32, #tpu.memory_space<vmem>>, vector<8x16xf32>,
      %c0_66 = arith.constant 0 : index
      %c0_67 = arith.constant 0 : index
      %94 = vector.load %arg12[%c0_66, %c0_67] : memref<8x32xf32, #tpu.memory_space<vmem>>, vector<8x32xf32>
      %95 = arith.truncf %94 : vector<8x32xf32> to vector<8x32xbf16>
      %c0_68 = arith.constant 0 : index
      %c0_69 = arith.constant 0 : index
      %96 = vector.load %arg8[%c0_68, %c0_69] : memref<32x32xbf16, #tpu.memory_space<vmem>>, vector<32x32xbf16>
      %cst_70 = arith.constant dense<0.000000e+00> : vector<8x32xf32>
      %97 = tpu.matmul %95, %96, %cst_70 {dimension_numbers = #tpu.dot_dimension_numbers<[1], [0], [0], [1], [0, 0, 1, 1], [], []>} : vector<8x32xbf16>, vector<32x32xbf16>, vector<8x32xf32> -> vector<8x32xf32>
      %c0_71 = arith.constant 0 : index
      %c0_72 = arith.constant 0 : index
      %98 = vector.load %arg9[%c0_71, %c0_72] : memref<1x32xf32, #tpu.memory_space<vmem>>, vector<1x32xf32>
      %99 = vector.broadcast %98 : vector<1x32xf32> to vector<8x32xf32>
      %100 = arith.addf %97, %99 : vector<8x32xf32>
      %c0_73 = arith.constant 0 : index
      %c0_74 = arith.constant 0 : index
      %c0_75 = arith.constant 0 : index
      %101 = vector.load %arg10[%c0_73, %c0_74, %c0_75] : memref<1x8x32xf32, #tpu.memory_space<vmem>>, vector<1x8x32xf32>
      %102 = vector.shape_cast %101 : vector<1x8x32xf32> to vector<8x32xf32>
      %103 = vector.shape_cast %100 : vector<8x32xf32> to vector<1x8x32xf32>
      tpu.vector_store %arg10[%c0_73, %c0_74, %c0_75], %103 {strides = array<i32>} : memref<1x8x32xf32, #tpu.memory_space<vmem>>, vector<1x8x32xf32>,
    } else {
    }
    return
  }
  func.func @transform_0(%arg0: i32, %arg1: i32, %arg2: i32) -> (i32, i32, i32) {
    %c0_i32 = arith.constant 0 : i32
    %c0_i32_0 = arith.constant 0 : i32
    return %arg0, %arg1, %c0_i32 : i32, i32, i32
  }
  func.func @transform_1(%arg0: i32, %arg1: i32, %arg2: i32) -> (i32, i32, i32) {
    %c0_i32 = arith.constant 0 : i32
    %c0_i32_0 = arith.constant 0 : i32
    return %arg0, %arg2, %c0_i32 : i32, i32, i32
  }
  func.func @transform_2(%arg0: i32, %arg1: i32, %arg2: i32) -> (i32, i32) {
    %c0_i32 = arith.constant 0 : i32
    %c0_i32_0 = arith.constant 0 : i32
    %c0_i32_1 = arith.constant 0 : i32
    return %c0_i32, %c0_i32_0 : i32, i32
  }
  func.func @transform_3(%arg0: i32, %arg1: i32, %arg2: i32) -> (i32, i32) {
    %c0_i32 = arith.constant 0 : i32
    %c0_i32_0 = arith.constant 0 : i32
    %c0_i32_1 = arith.constant 0 : i32
    return %c0_i32, %c0_i32_0 : i32, i32
  }
  func.func @transform_4(%arg0: i32, %arg1: i32, %arg2: i32) -> (i32, i32) {
    %c0_i32 = arith.constant 0 : i32
    %c0_i32_0 = arith.constant 0 : i32
    %c0_i32_1 = arith.constant 0 : i32
    return %c0_i32, %c0_i32_0 : i32, i32
  }
  func.func @transform_5(%arg0: i32, %arg1: i32, %arg2: i32) -> (i32, i32) {
    %c0_i32 = arith.constant 0 : i32
    %c0_i32_0 = arith.constant 0 : i32
    %c0_i32_1 = arith.constant 0 : i32
    return %c0_i32, %c0_i32_0 : i32, i32
  }
  func.func @transform_6(%arg0: i32, %arg1: i32, %arg2: i32) -> (i32, i32) {
    %c0_i32 = arith.constant 0 : i32
    %c0_i32_0 = arith.constant 0 : i32
    %c0_i32_1 = arith.constant 0 : i32
    return %c0_i32, %c0_i32_0 : i32, i32
  }
  func.func @transform_7(%arg0: i32, %arg1: i32, %arg2: i32) -> (i32, i32, i32) {
    %c0_i32 = arith.constant 0 : i32
    %c0_i32_0 = arith.constant 0 : i32
    return %arg0, %arg1, %c0_i32 : i32, i32, i32
  }
}

</mosaic_0001>

<bundles_post_ra>
// kernel: attention_forward.1
= control target key start
LH: loop header
LB: loop body
LE: loop exit
PB: predicated region body
PF: predicated region fallthrough
CT: control target
= control target key end

     0   :  { %12 = vsyncpa [#allocation7], 0  ;;  %s1206_s0 = inlined_call_operand.vmem [shape: bf16[2,8,32], index: 0, kind: input, shape index: {}, may-alias: {0,1}]   ;;  %s1207_s1 = inlined_call_operand.vmem [shape: bf16[2,8,32], index: 1, kind: input, shape index: {}, may-alias: {0,1}]   ;;  %s1208_s2 = inlined_call_operand.vmem [shape: bf16[32,32], index: 2, kind: input, shape index: {}]   ;;  %s1209_s3 = inlined_call_operand.vmem [shape: bf16[32,32], index: 3, kind: input, shape index: {}]   ;;  %s1210_s4 = inlined_call_operand.vmem [shape: bf16[32,32], index: 4, kind: input, shape index: {}]   ;;  %s1211_s5 = inlined_call_operand.vmem [shape: bf16[32,32], index: 5, kind: input, shape index: {}]   ;;  %s1212_s6 = inlined_call_operand.vmem [shape: f32[1,32], index: 6, kind: input, shape index: {}]   ;;  %s1213_s7 = inlined_call_operand.hbm [shape: f32[2,8,32], index: 7, kind: output, shape index: {}]  }
   0x1   :  { %14 = vsyncpa [#allocation7 + $0x1], 0  ;;  %s1048_s24 = smov 0   ;;  %s1050_s25 = smov 0  }
   0x2   :  { %s1052_s26 = smov 0   ;;  %s1054_s27 = smov 0  }
   0x3   :  { %s1056_s28 = smov 0   ;;  %s1058_s29 = smov 0  }
   0x4 LB: > { %s787_s30 = sadd.s32 4294967295, %s1001_s29   ;;  %s788_s8 = sadd.s32 4294967294, %s1001_s29   ;;  %s1001_s29 = sphi %s1058_s29, %s20_s29   ;;  %s997_s28 = sphi %s1056_s28, %s1220_s28   ;;  %s993_s27 = sphi %s1054_s27, %s1219_s27   ;;  %s989_s26 = sphi %s1052_s26, %s1218_s26   ;;  %s985_s25 = sphi %s1050_s25, %s1217_s25   ;;  %s981_s24 = sphi %s1048_s24, %s1216_s24  }
   0x5   : > { %s39_s9 = sadd.s32 1, %s997_s28  ;;  %s209_s10 = sadd.s32 1, %s989_s26 }
   0x6   : > { %p41_p0 = scmp.ge.s32.totalorder %s39_s9, 2  ;;  %p219_p1 = scmp.ne.s32.totalorder %s989_s26, %s985_s25 }
   0x7   : > { %p220_p2 = scmp.eq.s32.totalorder %s787_s30, 1  ;;  %p225_p3 = scmp.ne.s32.totalorder %s985_s25, %s981_s24 }
   0x8   : > { %s1222_s9 = smov (%p41_p0, %s39_s9), 0  ;;  %p226_p5 = scmp.eq.s32.totalorder %s788_s8, 1 }
   0x9   : > { %p1088_p4 = por %p220_p2, %p219_p1  ;;  %s204_s12 = ssub.s32 %s997_s28, %s1222_s9 }
   0xa   : > { %p791_p6 = scmp.ge.s32.totalorder %s1001_s29, 1  ;;  %p207_p7 = scmp.eq.s32.totalorder %s204_s12, 0 }
   0xb   : > { %p1095_p8 = por %p226_p5, %p225_p3  ;;  %p279_p9 = scmp.lt.s32.totalorder %s1001_s29, 3 }
   0xc   : > { %s1101_s14 = scalar_select %p207_p7, %s989_s26, %s209_s10  }
   0xd   : > { %p280_p10 = pnand %p791_p6, %p279_p9 }
   0xe   : > { %p320_p11 = scmp.lt.s32.totalorder (!%p280_p10), %s993_s27, 1  ;;  %s1003_s18 = smov (!%p280_p10), 112  }
   0xf   : > { %283 = sbr.rel (%p280_p10) target bundleno = 1074 (0x432), region = 48  ;;  %s317_s15 = sand.u32 (!%p280_p10), 1, %s985_s25  }
  0x10   : > { %s836_s16 = sshll.u32 (!%p280_p10), %s993_s27, 3 }
  0x11   : > { %s693_s20 = scalar_lea.hbm (!%p280_p10), %s1213_s7, %s836_s16 }
  0x12   : > { %s697_s8 = sshll.u32 (!%p280_p10), %s693_s20, 4  ;;  %s698_s8 = int_to_ptr.hbm [resolvable:$true] %s697_s8 }
  0x13   : > { %s937_s10 = sshra.s32 (!%p280_p10), %s698_s8, 4  ;;  %s938_s10 = int_to_ptr.hbm [resolvable:$true] %s937_s10 }
  0x14   : > { %v840_v0 = vld [vmem:[%s1208_s2 + $0x8] sm:$0xff]  ;;  %v839_v2 = vld [vmem:[%s1208_s2] sm:$0xff]  ;;  %s321_s23 = scalar_select %p320_p11, %s993_s27, 1  ;;  %vm356_vm0 = vcmask 261120   ;;  %vm374_vm1 = vcmask 257024   ;;  %vm448_vm2 = vcmask 130048  }
  0x15   : > { %v842_v1 = vld [vmem:[%s1209_s3 + $0x8] sm:$0xff]  ;;  %366 = vmatpush.bf16.msra.mxu0 %v840_v0  ;;  %v841_v3 = vld [vmem:[%s1209_s3] sm:$0xff]  ;;  %vm377_vm3 = vcmask 7168   ;;  %v1004_v26 = vmov -inf   ;;  %vm469_vm4 = vcmask 64512   ;;  %v1005_v31 = vmov 0   ;;  %p944_p1 = scmp.lt.s32.totalorder %s938_s10, %s1213_s7 }
  0x16   : > { %409 = vmatpush.bf16.msra.mxu1 %v842_v1  ;;  %s793_s30 = sshll.u32 %s321_s23, 2  ;;  %v844_v19 = vld [vmem:[%s1210_s4 + $0x8] sm:$0xff]  ;;  %v843_v20 = vld [vmem:[%s1210_s4] sm:$0xff]  ;;  %379 = vst.msk [vmem:[#allocation4 + $0x8] sm:$0xff] %vm377_vm3, %v1004_v26  ;;  %907 = vset.pattern.permute.xlu2 %v1005_v31  ;;  %v1006_v33 = vmov 0.0   ;;  %vm498_vm5 = vcmask 1043456  }
  0x17   : > { %s326_s12 = scalar_lea.vmem %s1206_s0, %s793_s30  ;;  %s333_s17 = scalar_lea.vmem %s1207_s1, %s793_s30  ;;  %439 = vmatpush.bf16.msra.mxu2 %v844_v19  ;;  %378 = vst.msk [vmem:[#allocation4] sm:$0xff] %vm377_vm3, %v1004_v26  ;;  %908 = vset.pattern.permute.xlu0 %v1005_v31  ;;  %vm617_vm6 = vcmask 261248   ;;  %v846_v26 = vld [vmem:[%s1211_s5 + $0x8] sm:$0xff] }
  0x18   : > { %v339_v4 = vld [vmem:[%s326_s12] sm:$0xf]  ;;  %909 = vset.pattern.permute.xlu1 %v1005_v31  ;;  %381 = vst.msk [vmem:[#allocation5 + $0x8] sm:$0xff] %vm377_vm3, %v1006_v33  ;;  %s1007_s23 = smov 16   ;;  %s682_s27 = scalar_lea.sflag [#allocation7], %s317_s15 }
  0x19   : > { %367 = vmatpush.bf16.msra.mxu0 %v839_v2  ;;  %v382_v5 = vld [vmem:[%s333_s17] sm:$0xf]  ;;  %376 = vst.msk [vmem:[#allocation3] sm:$0xff] %vm356_vm0, %v1006_v33  ;;  %s792_s17 = sshll.u32 %s317_s15, 3  ;;  %s939_s12 = scalar_lea.hbm %s938_s10, 8 }
  0x1a   : > { %410 = vmatpush.bf16.msra.mxu1 %v841_v3  ;;  %380 = vst.msk [vmem:[#allocation5] sm:$0xff] %vm377_vm3, %v1006_v33  ;;  %p940_p12 = scmp.ne.s32.totalorder %s938_s10, %s939_s12 }
  0x1b   : > { %440 = vmatpush.bf16.msra.mxu2 %v843_v20 }
  0x1c   : > { %803 = vmatmul.msk.bf16.vlgmr.msra.gmra.mxu0 %vm356_vm0, %v339_v4  ;;  %p941_p13 = pnand %p940_p12, %p1088_p4 }
  0x1d   : > { %812 = vmatmul.msk.bf16.vlgmr.msra.gmra.mxu1 %vm356_vm0, %v382_v5  ;;  %v555_v37 = vld [vmem:[#allocation4 + $0x8] sm:$0xff] }
  0x1e   : > { %821 = vmatmul.msk.bf16.vlgmr.msra.gmra.mxu2 %vm356_vm0, %v382_v5  ;;  %v468_v42 = vld [vmem:[#allocation4] sm:$0xff]  ;;  %p942_p0 = pneg %p941_p13 }
  0x1f   : > { %v572_v1 = vld [vmem:[#allocation5 + $0x8] sm:$0xff] }
  0x99   : > { %v369_v6 = vpop.f32.mrf.mxu0 }
  0x9a   : > { %v412_v7 = vpop.f32.mrf.mxu1  ;;  %v373_v8 = vpack.c.bf16 %v369_v6, %v369_v6 }
  0x9b   : > { %v416_v9 = vpack.c.bf16 %v412_v7, %v412_v7 }
  0x9c   : > { %375 = vst.msk [vmem:[#allocation2] sm:$0xf] %vm374_vm1, %v373_v8 }
  0x9d   : > { %v453_v10 = vsel %vm448_vm2, %v416_v9, 0  ;;  %v531_v11 = vunpack.c.l.b16 %v416_v9  ;;  %v485_v9 = vld [vmem:[#allocation5] sm:$0xff] }
  0x9e   : > { %462 = vmatpush.bf16.xpose.msra.mxu3 %v453_v10 }
  0x9f   : > { %v532_v12 = vpack.c.b16 %v531_v11, %v531_v11 }
  0xa1   : > { %533 = vrot.lane.b32.xlu0 %v532_v12, %s1003_s18  ;;  %v371_v14 = vpop.f32.mrf.mxu0  ;;  %v442_v32 = vpop.f32.mrf.mxu2 }
  0xa2   : > { %v414_v13 = vpop.f32.mrf.mxu1  ;;  %v446_v35 = vpack.c.bf16 %v442_v32, %v442_v32 }
  0xa3   : > { %v447_v15 = vld [vmem:[#allocation2] sm:$0xf] }
  0xa4   : > { %v524_v16 = vld [vmem:[#allocation2] sm:$0xf]  ;;  %v500_v36 = vsel %vm498_vm5, %v446_v35, 0  ;;  %v582_v40 = vunpack.c.l.b16 %v446_v35 }
  0xa5   : > { %822 = vmatmul.msk.bf16.vlgmr.msra.gmra.mxu3 %vm448_vm2, %v447_v15  ;;  %v526_v17 = vunpack.c.l.b16 %v524_v16  ;;  %509 = vmatpush.bf16.msrb.mxu0 %v500_v36  ;;  %v910_v36 = vld [vmem:[%s1212_s6] ss:$0 sm:$0xff] }
  0xa6   : > { %v583_v43 = vpack.c.b16 %v582_v40, %v582_v40  ;;  %673 = vmatpush.bf16.msrb.mxu3 %v846_v26 }
  0xa7   : > { %v527_v18 = vpack.c.b16 %v526_v17, %v526_v17  ;;  %v515_v17 = vld [vmem:[#allocation3] sm:$0xff] }
  0xa9   : > { %528 = vrot.lane.b32.xlu0 %v527_v18, %s1003_s18  ;;  %v444_v34 = vpop.f32.mrf.mxu2 }
 0x113   : > { %v534_v21 = vpop.permute.xlu0 %533 }
 0x114   : > { %v539_v22 = vsel %vm448_vm2, %v534_v21, 0 }
 0x115   : > { %548 = vmatpush.bf16.xpose.msrb.mxu1 %v539_v22 }
 0x11b   : > { %v529_v23 = vpop.permute.xlu0 %528 }
 0x11c   : > { %824 = vmatmul.msk.bf16.vlgmr.msrb.gmra.mxu1 %vm448_vm2, %v529_v23 }
 0x128   : > { %v464_v24 = vpop.f32.mrf.mxu3 }
 0x129   : > { %v470_v30 = vsel %vm469_vm4, %v464_v24, -inf }
 0x130   : > { %v466_v25 = vpop.f32.mrf.mxu3 }
 0x199   : > { %v550_v27 = vpop.f32.mrf.mxu1 }
 0x19a   : > { %v556_v28 = vsel %vm469_vm4, %v550_v27, -inf }
 0x19b   : > { %557 = vmax.xlane.f32.xlu1 %v556_v28 }
 0x1a1   : > { %v552_v29 = vpop.f32.mrf.mxu1 }
 0x1a3   : > { %471 = vmax.xlane.f32.xlu1 %v470_v30 }
 0x20e   : > { %v558_v38 = vpop.xlane.xlu1 %557 }
 0x20f   : > { %v559_v39 = vmax.f32 %v555_v37, %v558_v38 }
 0x211   : > { %579 = vst.msk [vmem:[#allocation4 + $0x8] sm:$0xff] %vm377_vm3, %v559_v39  ;;  %565 = vperm.xlu2 %907, %v559_v39   ;;  %v560_v41 = vsub.f32 %v555_v37, %v559_v39 }
 0x213   : > { %v561_v44 = vmul.f32 1.442695, %v560_v41 }
 0x215   : > { %911 = vpow2.f32 %v561_v44 }
 0x216   : > { %v472_v45 = vpop.xlane.xlu1 %471 }
 0x217   : > { %v473_v46 = vmax.f32 %v468_v42, %v472_v45 }
 0x219   : > { %v474_v47 = vsub.f32 %v468_v42, %v473_v46  ;;  %493 = vst.msk [vmem:[#allocation4] sm:$0xff] %vm377_vm3, %v473_v46  ;;  %479 = vperm.xlu0 %908, %v473_v46   ;;  %584 = vrot.lane.b32.xlu2 %v583_v43, %s1003_s18 }
 0x21b   : > { %v912_v48 = vpop.eup %911  ;;  %v475_v63 = vmul.f32 1.442695, %v474_v47 }
 0x21c   : > { %v573_v2 = vmul.f32 %v912_v48, %v572_v1 }
 0x221   : > { %608 = vperm.xlu0 %908, %v912_v48  }
 0x26b   : > { %v566_v49 = vpop.permute.xlu2 %565 }
 0x26c   : > { %v568_v50 = vsub.f32 %v550_v27, %v566_v49  ;;  %v845_v27 = vld [vmem:[%s1211_s5] sm:$0xff] }
 0x26d   : > { %674 = vmatpush.bf16.msrb.mxu3 %v845_v27 }
 0x26e   : > { %v569_v51 = vmul.f32 1.442695, %v568_v50 }
 0x270   : > { %913 = vpow2.f32 %v569_v51 }
 0x273   : > { %v585_v52 = vpop.permute.xlu2 %584 }
 0x274   : > { %v590_v53 = vsel %vm498_vm5, %v585_v52, 0 }
 0x275   : > { %599 = vmatpush.bf16.msrb.mxu2 %v590_v53 }
 0x276   : > { %v914_v54 = vpop.eup %913 }
 0x277   : > { %v574_v55 = vsel %vm469_vm4, %v914_v54, 0.0  ;;  %v580_v56 = vpack.c.bf16 %v914_v54, %v914_v54 }
 0x278   : > { %575 = vadd.xlane.f32.xlu2 %v574_v55 }
 0x279   : > { %825 = vmatmul.msk.bf16.vlgmr.msrb.gmra.mxu2 %vm469_vm4, %v580_v56 }
 0x28b   : > { %v480_v57 = vpop.permute.xlu0 %479 }
 0x28c   : > { %v482_v58 = vsub.f32 %v464_v24, %v480_v57 }
 0x28e   : > { %v483_v59 = vmul.f32 1.442695, %v482_v58 }
 0x290   : > { %915 = vpow2.f32 %v483_v59 }
 0x291   : > { %917 = vpow2.f32 %v475_v63 }
 0x293   : > { %v609_v21 = vpop.permute.xlu0 %608 }
 0x296   : > { %v916_v60 = vpop.eup %915 }
 0x297   : > { %v487_v61 = vsel %vm469_vm4, %v916_v60, 0.0  ;;  %v494_v62 = vpack.c.bf16 %v916_v60, %v916_v60  ;;  %v918_v0 = vpop.eup %917 }
 0x298   : > { %488 = vadd.xlane.f32.xlu1 %v487_v61  ;;  %v486_v10 = vmul.f32 %v918_v0, %v485_v9 }
 0x299   : > { %823 = vmatmul.msk.bf16.vlgmr.msrb.gmra.mxu0 %vm469_vm4, %v494_v62 }
 0x2b1   : > { %518 = vperm.xlu1 %909, %v918_v0  }
 0x2eb   : > { %v576_v3 = vpop.xlane.xlu2 %575 }
 0x2ec   : > { %v577_v4 = vadd.f32 %v576_v3, %v573_v2 }
 0x2ee   : > { %578 = vst.msk [vmem:[#allocation5 + $0x8] sm:$0xff] %vm377_vm3, %v577_v4 }
 0x2f5   : > { %v633_v5 = vld [vmem:[#allocation5 + $0x8] sm:$0xff] }
 0x2f6   : > { %919 = vrcp.f32 %v633_v5 }
 0x2fc   : > { %v920_v6 = vpop.eup %919  ;;  %v601_v7 = vpop.f32.mrf.mxu2 }
 0x2fd   : > { %613 = vrot.lane.b32.xlu0 %v601_v7, %s1007_s23  ;;  %637 = vperm.xlu1 %909, %v920_v6   ;;  %s319_s23 = scalar_lea.vmem [#allocation6], %s792_s17  ;;  %s943_s17 = scalar_lea.hbm %s1213_s7, 16 }
 0x2fe   : > { %s695_s30 = sshll.u32 %s319_s23, 4  ;;  %p945_p2 = scmp.lt.s32.totalorder %s943_s17, %s939_s12  ;;  %s696_s30 = int_to_ptr.vmem [resolvable:$true] %s695_s30 }
 0x300   : > { %p946_p3 = por %p945_p2, %p944_p1 }
 0x302   : > { %p947_p5 = pnand %p946_p3, %p942_p0 }
 0x304   : > { %v603_v8 = vpop.f32.mrf.mxu2 }
 0x30b   : > { %v489_v11 = vpop.xlane.xlu1 %488 }
 0x30c   : > { %v490_v12 = vadd.f32 %v489_v11, %v486_v10 }
 0x30e   : > { %492 = vst.msk [vmem:[#allocation5] sm:$0xff] %vm377_vm3, %v490_v12 }
 0x315   : > { %v623_v13 = vld [vmem:[#allocation5] sm:$0xff] }
 0x316   : > { %v511_v14 = vpop.f32.mrf.mxu0  ;;  %921 = vrcp.f32 %v623_v13 }
 0x31c   : > { %v922_v15 = vpop.eup %921 }
 0x31d   : > { %627 = vperm.xlu0 %908, %v922_v15  }
 0x31e   : > { %v513_v16 = vpop.f32.mrf.mxu0 }
 0x323   : > { %v519_v18 = vpop.permute.xlu1 %518 }
 0x324   : > { %v521_v19 = vmul.f32 %v519_v18, %v515_v17 }
 0x326   : > { %v522_v20 = vadd.f32 %v521_v19, %v511_v14 }
 0x328   : > { %523 = vst.msk [vmem:[#allocation3] sm:$0xff] %vm448_vm2, %v522_v20 }
 0x32f   : > { %v605_v22 = vld [vmem:[#allocation3] sm:$0xff] }
 0x330   : > { %v611_v23 = vmul.f32 %v609_v21, %v605_v22 }
 0x36f   : > { %v614_v24 = vpop.permute.xlu0 %613  ;;  %v638_v31 = vpop.permute.xlu1 %637 }
 0x370   : > { %v616_v25 = vadd.f32 %v614_v24, %v611_v23 }
 0x372   : > { %618 = vst.msk [vmem:[#allocation3] sm:$0xff] %vm617_vm6, %v616_v25 }
 0x379   : > { %v622_v29 = vld [vmem:[#allocation3] sm:$0xff] }
 0x38f   : > { %v628_v28 = vpop.permute.xlu0 %627 }
 0x390   : > { %v630_v30 = vmul.f32 %v628_v28, %v622_v29 }
 0x392   : > { %631 = vst.msk [vmem:[#allocation3] sm:$0xff] %vm448_vm2, %v630_v30 }
 0x399   : > { %v632_v32 = vld [vmem:[#allocation3] sm:$0xff] }
 0x39a   : > { %v640_v33 = vmul.f32 %v638_v31, %v632_v32 }
 0x39c   : > { %641 = vst.msk [vmem:[#allocation3] sm:$0xff] %vm617_vm6, %v640_v33 }
 0x3a3   : > { %v642_v34 = vld [vmem:[#allocation3] sm:$0xff] }
 0x3a4   : > { %v643_v35 = vpack.c.bf16 %v642_v34, %v642_v34 }
 0x3a6   : > { %834 = vmatmul.msk.bf16.vlgmr.msrb.gmra.mxu3 %vm356_vm0, %v643_v35 }
 0x429   : > { %v676_v37 = vpop.f32.mrf.mxu3 }
 0x42a   : > { %v677_v38 = vadd.f32 %v910_v36, %v676_v37 }
 0x42c   : > { %680 = vst.msk [vmem:[%s319_s23] sm:$0xff] %vm356_vm0, %v677_v38 }
 0x42d   : > { %950 = shalt.err (!%p947_p5)
}
 0x42e   : > { %847 = dma.vmem_to_hbm [thread:$0]  (%p1088_p4), %s696_s30, 128, %s698_s8, %s682_s27  }
 0x431   : > { %v678_v39 = vpop.f32.mrf.mxu3 }
 0x432 PF: > { %p853_p6 = scmp.ge.s32.totalorder %s1001_s29, 2  ;;  %s709_s15 = sand.u32 1, %s981_s24  }
 0x433   : > { %s710_s21 = scalar_lea.sflag [#allocation7], %s709_s15 }
 0x434   : > { %p850_p7 = pnand %p853_p6, %p1095_p8 }
 0x436   : > { %p851_p9 = pneg %p850_p7 }
 0x438   : > { %976 = dma.done.wait (%p851_p9), %s710_s21, 128  }
 0x439   : > { %978 = vsyncadd (%p851_p9), %s710_s21, 4294967168  ;;  %s20_s29 = sadd.s32 1, %s1001_s29   ;;  %s1216_s24 = smov %s985_s25 }
 0x43a   : > { %p17_p10 = scmp.ge.s32.totalorder %s20_s29, 4   ;;  %s1217_s25 = smov %s989_s26 }
 0x43b   : > { %s1218_s26 = smov %s1101_s14  ;;  %s1219_s27 = smov %s997_s28 }
 0x43c   : > { %s1220_s28 = smov %s1222_s9  ;;  %19 = sbr.rel (!%p17_p10) target bundleno = 4 (0x4), region = 96 }
 0x441   :  { %716 = vsyncpa [#allocation7], 1 }
 0x442   :  { %718 = vsyncpa [#allocation7 + $0x1], 1 }

</bundles_post_ra>
